<compile_context>
chip_gen: v6e
topology: v6e:2x2x1
jax: 0.10.0
libtpu: 0.0.40
codegen_flags: <defaults>
</compile_context>

<pallas_src>
import functools

import jax
import jax.numpy as jnp
from jax.experimental import pallas as pl
from jax.experimental.pallas import tpu as pltpu

BN_EPS = 1e-5
_MIB = 1024 * 1024
# Double-buffered tile budget, conservative enough for v7x's 64 MiB physical
# VMEM while still giving v5e/v6e large row tiles.
_TILE_BUDGET_BYTES = 32 * _MIB


def _round_up(a: int, b: int) -> int:
    return (a + b - 1) // b * b


def _pick_row_tile(n: int, cap: int):
    """Pick a row tile <= cap, preferring one that divides n (no padding)."""
    cap = max(8, (cap // 8) * 8)
    if n <= cap:
        return n, n                      # single tile, block == full array dim
    t = cap
    t_min = min(cap, 256)                # don't accept tiny divisors
    while t >= t_min:
        if n % t == 0:
            return t, n                  # exact tiling, no padding
        t -= 8
    return cap, _round_up(n, cap)        # fall back to padding


def _stats_kernel(x_ref, wt_ref, stats_ref):
    # x_ref:     (tm, cin)          f32 row tile
    # wt_ref:    (cin, cout_pad)    bf16 pre-transposed weight (resident)
    # stats_ref: (1, 8, cout_pad)   f32: row 0 = sum(y), row 1 = sum(y*y)
    y = jnp.dot(x_ref[...].astype(jnp.bfloat16), wt_ref[...],
                preferred_element_type=jnp.float32)
    stats_ref[...] = jnp.zeros_like(stats_ref)
    stats_ref[0, 0:1, :] = jnp.sum(y, axis=0, keepdims=True)
    stats_ref[0, 1:2, :] = jnp.sum(y * y, axis=0, keepdims=True)


def _normalize_kernel(x_ref, wt_ref, scale_ref, shift_ref, o_ref):
    # scale/shift: (1, cout_pad) f32, precomputed once outside the kernel.
    y = jnp.dot(x_ref[...].astype(jnp.bfloat16), wt_ref[...],
                preferred_element_type=jnp.float32)
    o_ref[...] = jnp.maximum(y * scale_ref[...] + shift_ref[...],
                             0.0).astype(o_ref.dtype)


@functools.partial(jax.jit, static_argnames=("block_rows",))
def fcn_forward(x, w, b, gamma, beta, *, block_rows: int = 1024):
    """x: (kk, t, cin), w: (cout, cin), b/gamma/beta: (cout,) -> (kk, t, cout).

    Matches FCN.forward in training mode (BatchNorm uses batch statistics).
    `b` is accepted for API parity but is a mathematical no-op under
    training-mode BN (the batch-mean subtraction cancels it exactly).
    """
    del b  # cancelled exactly by the BN mean subtraction
    kk, t, cin = x.shape
    cout = w.shape[0]
    n = kk * t

    cout_pad = _round_up(cout, 128)      # lane-dense stores, full MXU columns

    # ---- derive row tile & VMEM limit from a v7x-safe budget ---------------
    w_bytes = cin * cout_pad * 2                         # resident W^T (bf16)
    fixed = 2 * w_bytes + 8 * cout_pad * 4               # + scale/shift/stats
    per_row = 2 * cin * 4 + 2 * cout_pad * 4             # dbl-buffered x + out
    avail = max(_TILE_BUDGET_BYTES - fixed, per_row * 8)
    cap = min(block_rows, max(8, avail // per_row))
    tm, n_pad = _pick_row_tile(n, cap)
    n_tiles = n_pad // tm

    need = fixed + per_row * tm + 2 * 8 * cout_pad * 4
    vmem_limit = int(min(max(need + 12 * _MIB, 24 * _MIB), 56 * _MIB))

    # ---- operands ----------------------------------------------------------
    x2d = x.reshape(n, cin).astype(jnp.float32)
    if n_pad != n:
        x2d = jnp.pad(x2d, ((0, n_pad - n), (0, 0)))

    wt = jnp.transpose(w).astype(jnp.bfloat16)           # (cin, cout) bf16
    pad_c = cout_pad - cout
    if pad_c:
        wt = jnp.pad(wt, ((0, 0), (0, pad_c)))
        gamma = jnp.pad(gamma, (0, pad_c))
        beta = jnp.pad(beta, (0, pad_c))
    gamma = gamma.astype(jnp.float32)
    beta = beta.astype(jnp.float32)

    cparams = pltpu.CompilerParams(
        dimension_semantics=("parallel",),               # v7x: both TensorCores
        vmem_limit_bytes=vmem_limit,
    )

    # ---- pass 1: per-tile partial batch statistics -------------------------
    stats = pl.pallas_call(
        _stats_kernel,
        out_shape=jax.ShapeDtypeStruct((n_tiles, 8, cout_pad), jnp.float32),
        grid_spec=pltpu.PrefetchScalarGridSpec(
            num_scalar_prefetch=0,
            grid=(n_tiles,),
            in_specs=[
                pl.BlockSpec((tm, cin), lambda i: (i, 0)),         # x tile
                pl.BlockSpec((cin, cout_pad), lambda i: (0, 0)),   # W^T resident
            ],
            out_specs=pl.BlockSpec((1, 8, cout_pad), lambda i: (i, 0, 0)),
        ),
        compiler_params=cparams,
    )(x2d, wt)

    # Combine partials and fold BN into a single scale/shift (tiny O(cout) ops,
    # computed exactly once instead of per row tile).
    sums = jnp.sum(stats[:, 0, :], axis=0)               # (cout_pad,)
    sqs = jnp.sum(stats[:, 1, :], axis=0)
    inv_n = 1.0 / float(n)
    mean = sums * inv_n
    # Biased (1/N) variance, matching PyTorch BatchNorm1d normalization.
    var = jnp.maximum(sqs * inv_n - mean * mean, 0.0)
    inv_std = jax.lax.rsqrt(var + BN_EPS)
    scale_vec = gamma * inv_std
    shift_vec = beta - mean * scale_vec
    scale2d = scale_vec.reshape(1, cout_pad)
    shift2d = shift_vec.reshape(1, cout_pad)

    # ---- pass 2: recompute y, apply fused BN scale/shift + ReLU ------------
    out2d = pl.pallas_call(
        _normalize_kernel,
        out_shape=jax.ShapeDtypeStruct((n_pad, cout_pad), jnp.float32),
        grid_spec=pltpu.PrefetchScalarGridSpec(
            num_scalar_prefetch=0,
            grid=(n_tiles,),
            in_specs=[
                pl.BlockSpec((tm, cin), lambda i: (i, 0)),         # x tile
                pl.BlockSpec((cin, cout_pad), lambda i: (0, 0)),   # W^T resident
                pl.BlockSpec((1, cout_pad), lambda i: (0, 0)),     # scale
                pl.BlockSpec((1, cout_pad), lambda i: (0, 0)),     # shift
            ],
            out_specs=pl.BlockSpec((tm, cout_pad), lambda i: (i, 0)),
        ),
        compiler_params=cparams,
    )(x2d, wt, scale2d, shift2d)

    if n_pad != n or cout_pad != cout:
        out2d = out2d[:n, :cout]
    return out2d.reshape(kk, t, cout)


def _reference_f32(x, w, b, gamma, beta):
    """Pure-JAX reference of the PyTorch module's forward (training mode)."""
    kk, t, cin = x.shape
    n = kk * t
    y = x.reshape(n, cin) @ w.T + b
    mean = jnp.mean(y, axis=0, keepdims=True)
    var = jnp.mean((y - mean) ** 2, axis=0, keepdims=True)  # biased, like BN
    y = (y - mean) * jax.lax.rsqrt(var + BN_EPS) * gamma + beta
    return jnp.maximum(y, 0.0).reshape(kk, t, -1)


def _reference_bf16_matmul(x, w, b, gamma, beta):
    """Same math, but matmul inputs cast to bf16 (f32 accumulation) — matches
    the kernel's deliberate MXU precision policy."""
    kk, t, cin = x.shape
    n = kk * t
    y = jnp.dot(x.reshape(n, cin).astype(jnp.bfloat16),
                jnp.transpose(w).astype(jnp.bfloat16),
                preferred_element_type=jnp.float32) + b
    mean = jnp.mean(y, axis=0, keepdims=True)
    var = jnp.mean((y - mean) ** 2, axis=0, keepdims=True)
    y = (y - mean) * jax.lax.rsqrt(var + BN_EPS) * gamma + beta
    return jnp.maximum(y, 0.0).reshape(kk, t, -1)


if __name__ == "__main__":
    # Small shapes consistent with the module: x has shape (kk, t, cin)
    kk, t, cin, cout = 2, 8, 32, 64

    key = jax.random.PRNGKey(0)
    kx, kw, kb = jax.random.split(key, 3)

    x = jax.random.normal(kx, (kk, t, cin), dtype=jnp.float32)

    # Deterministic parameter init (PyTorch nn.Linear-style uniform bound)
    bound = 1.0 / jnp.sqrt(jnp.float32(cin))
    w = jax.random.uniform(kw, (cout, cin), jnp.float32, -bound, bound)
    b = jax.random.uniform(kb, (cout,), jnp.float32, -bound, bound)
    gamma = jnp.ones((cout,), jnp.float32)   # BatchNorm1d weight
    beta = jnp.zeros((cout,), jnp.float32)   # BatchNorm1d bias

    out = jax.block_until_ready(fcn_forward(x, w, b, gamma, beta))
    assert out.shape == (kk, t, cout), out.shape
    assert bool(jnp.all(jnp.isfinite(out)))

    # Tight check against a reference with the same (bf16-fed MXU) precision
    # policy: isolates kernel-logic correctness from the dtype choice.
    ref_bf16 = jax.block_until_ready(_reference_bf16_matmul(x, w, b, gamma, beta))
    assert jnp.allclose(out, ref_bf16, atol=1e-2, rtol=1e-2), \
        float(jnp.max(jnp.abs(out - ref_bf16)))

    # Loose sanity check against the full-f32 module reference (the only
    # difference is the deliberate bf16 MXU feeding).
    ref_f32 = jax.block_until_ready(_reference_f32(x, w, b, gamma, beta))
    assert jnp.allclose(out, ref_f32, atol=2e-1, rtol=2e-1), \
        float(jnp.max(jnp.abs(out - ref_f32)))

    print("KERNEL_OK")
</pallas_src>

<mosaic_0001>
module attributes {stable_mosaic.version = 11 : i64} {
  func.func @_stats_kernel(%arg0: i32, %arg1: memref<16x32xf32, #tpu.memory_space<vmem>>, %arg2: memref<32x128xbf16, #tpu.memory_space<vmem>>, %arg3: memref<1x8x128xf32, #tpu.memory_space<vmem>>) attributes {dimension_semantics = [#tpu.dimension_semantics<parallel>], iteration_bounds = array<i64: 1>, scalar_prefetch = 0 : i64, scratch_operands = 0 : i64, tpu.core_type = #tpu.core_type<tc>, window_params = [{transform_indices = @transform_0, window_bounds = array<i64: 16, 32>}, {pipeline_mode = #tpu.pipeline_mode<synchronous>, transform_indices = @transform_1, window_bounds = array<i64: 32, 128>}, {transform_indices = @transform_2, window_bounds = array<i64: 1, 8, 128>}]} {
    %c0 = arith.constant 0 : index
    %c0_0 = arith.constant 0 : index
    %0 = vector.load %arg1[%c0, %c0_0] : memref<16x32xf32, #tpu.memory_space<vmem>>, vector<16x32xf32>
    %1 = arith.truncf %0 : vector<16x32xf32> to vector<16x32xbf16>
    %c0_1 = arith.constant 0 : index
    %c0_2 = arith.constant 0 : index
    %2 = vector.load %arg2[%c0_1, %c0_2] : memref<32x128xbf16, #tpu.memory_space<vmem>>, vector<32x128xbf16>
    %cst = arith.constant dense<0.000000e+00> : vector<16x128xf32>
    %3 = tpu.matmul %1, %2, %cst {dimension_numbers = #tpu.dot_dimension_numbers<[1], [0], [0], [1], [0, 0, 1, 1], [], []>} : vector<16x32xbf16>, vector<32x128xbf16>, vector<16x128xf32> -> vector<16x128xf32>
    %cst_3 = arith.constant 0.000000e+00 : f32
    %4 = vector.broadcast %cst_3 : f32 to vector<1x8x128xf32>
    %c0_4 = arith.constant 0 : index
    %c0_5 = arith.constant 0 : index
    %c0_6 = arith.constant 0 : index
    %5 = vector.load %arg3[%c0_4, %c0_5, %c0_6] : memref<1x8x128xf32, #tpu.memory_space<vmem>>, vector<1x8x128xf32>
    tpu.vector_store %arg3[%c0_4, %c0_5, %c0_6], %4 {strides = array<i32>} : memref<1x8x128xf32, #tpu.memory_space<vmem>>, vector<1x8x128xf32>,
    %cst_7 = arith.constant dense<0.000000e+00> : vector<128xf32>
    %6 = vector.multi_reduction <add>, %3, %cst_7 [0] : vector<16x128xf32> to vector<128xf32>
    %7 = vector.shape_cast %6 : vector<128xf32> to vector<1x128xf32>
    %c0_8 = arith.constant 0 : index
    %c0_9 = arith.constant 0 : index
    %c0_10 = arith.constant 0 : index
    %8 = vector.load %arg3[%c0_8, %c0_9, %c0_10] : memref<1x8x128xf32, #tpu.memory_space<vmem>>, vector<1x1x128xf32>
    %9 = vector.shape_cast %8 : vector<1x1x128xf32> to vector<1x128xf32>
    %10 = vector.shape_cast %7 : vector<1x128xf32> to vector<1x1x128xf32>
    tpu.vector_store %arg3[%c0_8, %c0_9, %c0_10], %10 {strides = array<i32>} : memref<1x8x128xf32, #tpu.memory_space<vmem>>, vector<1x1x128xf32>,
    %11 = arith.mulf %3, %3 : vector<16x128xf32>
    %cst_11 = arith.constant dense<0.000000e+00> : vector<128xf32>
    %12 = vector.multi_reduction <add>, %11, %cst_11 [0] : vector<16x128xf32> to vector<128xf32>
    %13 = vector.shape_cast %12 : vector<128xf32> to vector<1x128xf32>
    %c0_12 = arith.constant 0 : index
    %c1 = arith.constant 1 : index
    %c0_13 = arith.constant 0 : index
    %14 = vector.load %arg3[%c0_12, %c1, %c0_13] : memref<1x8x128xf32, #tpu.memory_space<vmem>>, vector<1x1x128xf32>
    %15 = vector.shape_cast %14 : vector<1x1x128xf32> to vector<1x128xf32>
    %16 = vector.shape_cast %13 : vector<1x128xf32> to vector<1x1x128xf32>
    tpu.vector_store %arg3[%c0_12, %c1, %c0_13], %16 {strides = array<i32>} : memref<1x8x128xf32, #tpu.memory_space<vmem>>, vector<1x1x128xf32>,
    return
  }
  func.func @transform_0(%arg0: i32) -> (i32, i32) {
    %c0_i32 = arith.constant 0 : i32
    %c0_i32_0 = arith.constant 0 : i32
    return %arg0, %c0_i32 : i32, i32
  }
  func.func @transform_1(%arg0: i32) -> (i32, i32) {
    %c0_i32 = arith.constant 0 : i32
    %c0_i32_0 = arith.constant 0 : i32
    %c0_i32_1 = arith.constant 0 : i32
    return %c0_i32, %c0_i32_0 : i32, i32
  }
  func.func @transform_2(%arg0: i32) -> (i32, i32, i32) {
    %c0_i32 = arith.constant 0 : i32
    %c0_i32_0 = arith.constant 0 : i32
    %c0_i32_1 = arith.constant 0 : i32
    return %arg0, %c0_i32, %c0_i32_0 : i32, i32, i32
  }
}

module attributes {stable_mosaic.version = 11 : i64} {
  func.func @_normalize_kernel(%arg0: i32, %arg1: memref<16x32xf32, #tpu.memory_space<vmem>>, %arg2: memref<32x128xbf16, #tpu.memory_space<vmem>>, %arg3: memref<1x128xf32, #tpu.memory_space<vmem>>, %arg4: memref<1x128xf32, #tpu.memory_space<vmem>>, %arg5: memref<16x128xf32, #tpu.memory_space<vmem>>) attributes {dimension_semantics = [#tpu.dimension_semantics<parallel>], iteration_bounds = array<i64: 1>, scalar_prefetch = 0 : i64, scratch_operands = 0 : i64, tpu.core_type = #tpu.core_type<tc>, window_params = [{transform_indices = @transform_0, window_bounds = array<i64: 16, 32>}, {pipeline_mode = #tpu.pipeline_mode<synchronous>, transform_indices = @transform_1, window_bounds = array<i64: 32, 128>}, {pipeline_mode = #tpu.pipeline_mode<synchronous>, transform_indices = @transform_2, window_bounds = array<i64: 1, 128>}, {pipeline_mode = #tpu.pipeline_mode<synchronous>, transform_indices = @transform_3, window_bounds = array<i64: 1, 128>}, {transform_indices = @transform_4, window_bounds = array<i64: 16, 128>}]} {
    %c0 = arith.constant 0 : index
    %c0_0 = arith.constant 0 : index
    %0 = vector.load %arg1[%c0, %c0_0] : memref<16x32xf32, #tpu.memory_space<vmem>>, vector<16x32xf32>
    %1 = arith.truncf %0 : vector<16x32xf32> to vector<16x32xbf16>
    %c0_1 = arith.constant 0 : index
    %c0_2 = arith.constant 0 : index
    %2 = vector.load %arg2[%c0_1, %c0_2] : memref<32x128xbf16, #tpu.memory_space<vmem>>, vector<32x128xbf16>
    %cst = arith.constant dense<0.000000e+00> : vector<16x128xf32>
    %3 = tpu.matmul %1, %2, %cst {dimension_numbers = #tpu.dot_dimension_numbers<[1], [0], [0], [1], [0, 0, 1, 1], [], []>} : vector<16x32xbf16>, vector<32x128xbf16>, vector<16x128xf32> -> vector<16x128xf32>
    %c0_3 = arith.constant 0 : index
    %c0_4 = arith.constant 0 : index
    %4 = vector.load %arg3[%c0_3, %c0_4] : memref<1x128xf32, #tpu.memory_space<vmem>>, vector<1x128xf32>
    %5 = vector.broadcast %4 : vector<1x128xf32> to vector<16x128xf32>
    %6 = arith.mulf %3, %5 : vector<16x128xf32>
    %c0_5 = arith.constant 0 : index
    %c0_6 = arith.constant 0 : index
    %7 = vector.load %arg4[%c0_5, %c0_6] : memref<1x128xf32, #tpu.memory_space<vmem>>, vector<1x128xf32>
    %8 = vector.broadcast %7 : vector<1x128xf32> to vector<16x128xf32>
    %9 = arith.addf %6, %8 : vector<16x128xf32>
    %cst_7 = arith.constant 0.000000e+00 : f32
    %10 = vector.broadcast %cst_7 : f32 to vector<16x128xf32>
    %11 = arith.maximumf %9, %10 : vector<16x128xf32>
    %c0_8 = arith.constant 0 : index
    %c0_9 = arith.constant 0 : index
    %12 = vector.load %arg5[%c0_8, %c0_9] : memref<16x128xf32, #tpu.memory_space<vmem>>, vector<16x128xf32>
    tpu.vector_store %arg5[%c0_8, %c0_9], %11 {strides = array<i32>} : memref<16x128xf32, #tpu.memory_space<vmem>>, vector<16x128xf32>,
    return
  }
  func.func @transform_0(%arg0: i32) -> (i32, i32) {
    %c0_i32 = arith.constant 0 : i32
    %c0_i32_0 = arith.constant 0 : i32
    return %arg0, %c0_i32 : i32, i32
  }
  func.func @transform_1(%arg0: i32) -> (i32, i32) {
    %c0_i32 = arith.constant 0 : i32
    %c0_i32_0 = arith.constant 0 : i32
    %c0_i32_1 = arith.constant 0 : i32
    return %c0_i32, %c0_i32_0 : i32, i32
  }
  func.func @transform_2(%arg0: i32) -> (i32, i32) {
    %c0_i32 = arith.constant 0 : i32
    %c0_i32_0 = arith.constant 0 : i32
    %c0_i32_1 = arith.constant 0 : i32
    return %c0_i32, %c0_i32_0 : i32, i32
  }
  func.func @transform_3(%arg0: i32) -> (i32, i32) {
    %c0_i32 = arith.constant 0 : i32
    %c0_i32_0 = arith.constant 0 : i32
    %c0_i32_1 = arith.constant 0 : i32
    return %c0_i32, %c0_i32_0 : i32, i32
  }
  func.func @transform_4(%arg0: i32) -> (i32, i32) {
    %c0_i32 = arith.constant 0 : i32
    %c0_i32_0 = arith.constant 0 : i32
    return %arg0, %c0_i32 : i32, i32
  }
}

</mosaic_0001>

<bundles_post_ra>
// kernel: fcn_forward.2
= control target key start
LH: loop header
LB: loop body
LE: loop exit
PB: predicated region body
PF: predicated region fallthrough
CT: control target
= control target key end

     0   :  { %v117_v0 = vmov 0.0   ;;  %vm118_vm0 = vmmov 0   ;;  %vm31_vm1 = vcmask 261120   ;;  %s155_s2 = inlined_call_operand.vmem [shape: f32[1,8,128], index: 2, kind: output, shape index: {}]   ;;  %s156_s1 = inlined_call_operand.vmem [shape: bf16[32,128], index: 1, kind: input, shape index: {}]   ;;  %s157_s0 = inlined_call_operand.vmem [shape: f32[16,32], index: 0, kind: input, shape index: {}]  }
   0x1   :  { %105 = vmatprep.subr.bf16.mxu0 %v117_v0  ;;  %76 = vst [vmem:[%s155_s2] sm:$0xff] %v117_v0  ;;  %v115_v1 = vld [vmem:[%s156_s1 + $0x8] sm:$0xff]   ;;  %109 = vmatprep.mubr.msk.bf16.mxu0 %vm118_vm0, %v117_v0  ;;  %v116_v2 = vld [vmem:[%s156_s1] sm:$0xff]  }
   0x2   :  { %106 = vmatpush3.bf16.msra.mxu0 %v115_v1  ;;  %v12_v3 = vld [vmem:[%s157_s0] sm:$0xff]  ;;  %v13_v4 = vld [vmem:[%s157_s0 + $0x8] sm:$0xff] }
   0x3   :  { %107 = vmatprep.subr.bf16.mxu0 %v117_v0  ;;  %v14_v5 = vpack.c.bf16 %v13_v4, %v12_v3 }
   0x6   :  { %108 = vmatpush3.bf16.msra.mxu0 %v116_v2 }
   0x9   :  { %110 = vmatmul.mubr.msk.bf16.vlgmr.msra.gmra.mxu0 %vm31_vm1, %v14_v5 }
  0xc9   :  { %v69_v6 = vpop.f32.mrf.mxu0 }
  0xca   :  { %v85_v9 = vmul.f32 %v69_v6, %v69_v6 }
  0xcb   :  { %v111_v7 = vpop.f32.mrf.mxu0 }
  0xcd   :  { %v72_v8 = vpop.f32.mrf.mxu0 }
  0xce   :  { %v77_v10 = vadd.f32 %v72_v8, %v69_v6  ;;  %v86_v11 = vmul.f32 %v72_v8, %v72_v8 }
  0xcf   :  { %v112_v12 = vpop.f32.mrf.mxu0 }
  0xd0   :  { %v78_v13 = vrot.slane %v77_v10, 4  ;;  %v87_v14 = vadd.f32 %v86_v11, %v85_v9 }
  0xd2   :  { %v79_v15 = vadd.f32 %v78_v13, %v77_v10  ;;  %v88_v16 = vrot.slane %v87_v14, 4 }
  0xd4   :  { %v80_v17 = vrot.slane %v79_v15, 2  ;;  %v89_v18 = vadd.f32 %v88_v16, %v87_v14 }
  0xd6   :  { %v81_v19 = vadd.f32 %v80_v17, %v79_v15  ;;  %v90_v20 = vrot.slane %v89_v18, 2 }
  0xd8   :  { %v82_v21 = vrot.slane %v81_v19, 1  ;;  %v91_v22 = vadd.f32 %v90_v20, %v89_v18 }
  0xda   :  { %v83_v23 = vadd.f32 %v82_v21, %v81_v19  ;;  %v92_v24 = vrot.slane %v91_v22, 1 }
  0xdc   :  { %84 = vst [vmem:[%s155_s2] sm:$0x1] %v83_v23  ;;  %v93_v25 = vadd.f32 %v92_v24, %v91_v22 }
  0xde   :  { %94 = vst [vmem:[%s155_s2 + $0x1] sm:$0x1] %v93_v25 }

// kernel: fcn_forward.3
= control target key start
LH: loop header
LB: loop body
LE: loop exit
PB: predicated region body
PF: predicated region fallthrough
CT: control target
= control target key end

     0   :  { %v128_v0 = vmov 0.0   ;;  %vm129_vm0 = vmmov 0   ;;  %vm37_vm1 = vcmask 261120   ;;  %s179_s1 = inlined_call_operand.vmem [shape: bf16[32,128], index: 1, kind: input, shape index: {}]   ;;  %s180_s0 = inlined_call_operand.vmem [shape: f32[16,32], index: 0, kind: input, shape index: {}]   ;;  %s181_s2 = inlined_call_operand.vmem [shape: f32[1,128], index: 2, kind: input, shape index: {}]   ;;  %s182_s3 = inlined_call_operand.vmem [shape: f32[1,128], index: 3, kind: input, shape index: {}]   ;;  %s183_s4 = inlined_call_operand.vmem [shape: f32[16,128], index: 4, kind: output, shape index: {}]  }
   0x1   :  { %116 = vmatprep.subr.bf16.mxu0 %v128_v0  ;;  %v126_v1 = vld [vmem:[%s179_s1 + $0x8] sm:$0xff]   ;;  %120 = vmatprep.mubr.msk.bf16.mxu0 %vm129_vm0, %v128_v0  ;;  %v127_v2 = vld [vmem:[%s179_s1] sm:$0xff]  }
   0x2   :  { %117 = vmatpush3.bf16.msra.mxu0 %v126_v1  ;;  %v18_v3 = vld [vmem:[%s180_s0] sm:$0xff]  ;;  %v19_v4 = vld [vmem:[%s180_s0 + $0x8] sm:$0xff] }
   0x3   :  { %118 = vmatprep.subr.bf16.mxu0 %v128_v0  ;;  %v20_v5 = vpack.c.bf16 %v19_v4, %v18_v3  ;;  %v111_v6 = vld [vmem:[%s181_s2] ss:$0 sm:$0xff] }
   0x4   :  { %v112_v8 = vld [vmem:[%s182_s3] ss:$0 sm:$0xff] }
   0x6   :  { %119 = vmatpush3.bf16.msra.mxu0 %v127_v2 }
   0x9   :  { %121 = vmatmul.mubr.msk.bf16.vlgmr.msra.gmra.mxu0 %vm37_vm1, %v20_v5 }
  0xc9   :  { %v75_v7 = vpop.f32.mrf.mxu0 }
  0xca   :  { %v89_v9 = vmul.f32 %v111_v6, %v75_v7 }
  0xcb   :  { %v122_v10 = vpop.f32.mrf.mxu0 }
  0xcc   :  { %v98_v11 = vadd.f32 %v112_v8, %v89_v9 }
  0xcd   :  { %v78_v12 = vpop.f32.mrf.mxu0 }
  0xce   :  { %v100_v13 = vmax.f32 %v98_v11, 0.0  ;;  %v90_v14 = vmul.f32 %v111_v6, %v78_v12 }
  0xcf   :  { %v123_v15 = vpop.f32.mrf.mxu0 }
  0xd0   :  { %102 = vst [vmem:[%s183_s4] sm:$0xff] %v100_v13  ;;  %v99_v16 = vadd.f32 %v112_v8, %v90_v14 }
  0xd2   :  { %v101_v17 = vmax.f32 %v99_v16, 0.0 }
  0xd4   :  { %103 = vst [vmem:[%s183_s4 + $0x8] sm:$0xff] %v101_v17 }

</bundles_post_ra>
